<compile_context>
chip_gen: v6e
topology: v6e:2x2x1
jax: 0.10.0
libtpu: 0.0.40
codegen_flags: <defaults>
</compile_context>

<pallas_src>
import functools
import math

import jax
import jax.numpy as jnp
from jax.experimental import pallas as pl
from jax.experimental.pallas import tpu as pltpu


# ----------------------------- config (synthetic) -----------------------------
CONV1_CHANNELS, CONV1_KERNEL_SIZE, CONV1_STRIDE = 16, 8, 4
CONV2_CHANNELS, CONV2_KERNEL_SIZE, CONV2_STRIDE = 32, 4, 2
CONV3_CHANNELS, CONV3_KERNEL_SIZE, CONV3_STRIDE = 32, 3, 1
FC_SIZE = 128
BN_EPS = 1e-5

LANE = 128      # TPU vreg lane count
SUBLANE = 8     # TPU vreg sublane count


def _round_up(x, m):
    return (x + m - 1) // m * m


# ------------------------- Pallas kernel 1: conv1 ------------------------------
def affine_matmul_kernel(x_ref, w_ref, shift_ref, o_ref, *, apply_relu):
    """o = maybe_relu(x @ w + shift); BN scale is pre-folded into w columns."""
    acc = jnp.dot(x_ref[...], w_ref[...], preferred_element_type=jnp.float32)
    out = acc + shift_ref[...]           # f32 epilogue (no bf16 VALU on v5e)
    if apply_relu:
        out = jnp.maximum(out, 0.0)
    o_ref[...] = out.astype(o_ref.dtype)


def affine_matmul(x, w, shift, *, apply_relu, n_valid,
                  out_dtype=jnp.float32, block_m=512):
    """x: [M, K] (bf16), w: [K, N] (bf16, N lane-padded), shift: [1, N] (f32).

    n_valid: true (unpadded) output-channel count, used only for CostEstimate.
    """
    M, K = x.shape
    K2, N = w.shape
    assert K == K2 and shift.shape == (1, N)
    tm = min(block_m, _round_up(M, SUBLANE))
    M_pad = _round_up(M, tm)
    if M_pad != M:
        x = jnp.pad(x, ((0, M_pad - M), (0, 0)))
    grid = (M_pad // tm,)
    cost = pl.CostEstimate(
        flops=int(2 * M * K * n_valid),      # real channels, not lane-padded N
        transcendentals=0,
        bytes_accessed=int(x.size * x.dtype.itemsize + w.size * w.dtype.itemsize
                           + shift.size * 4
                           + M_pad * N * jnp.dtype(out_dtype).itemsize))
    out = pl.pallas_call(
        functools.partial(affine_matmul_kernel, apply_relu=apply_relu),
        out_shape=jax.ShapeDtypeStruct((M_pad, N), out_dtype),
        grid=grid,
        in_specs=[
            pl.BlockSpec((tm, K), lambda i: (i, 0)),
            pl.BlockSpec((K, N), lambda i: (0, 0)),
            pl.BlockSpec((1, N), lambda i: (0, 0)),
        ],
        out_specs=pl.BlockSpec((tm, N), lambda i: (i, 0)),
        compiler_params=pltpu.CompilerParams(
            dimension_semantics=("parallel",)),
        cost_estimate=cost,
    )(x, w, shift)
    return out[:M]


# -------------- Pallas kernel 2: conv2 + conv3 + fc1 + fc2 (fused) --------------
def dqn_tail_kernel(p2_ref, w2_ref, s2_ref, w3_ref, s3_ref,
                    wf1_ref, b1_ref, wf2_ref, b2_ref, o_ref, *, tb, n_pos, c2):
    """One batch block (tb rows) of the network tail, fully VMEM-resident.

    p2_ref: [n_pos*tb, K2] conv2 im2col patches, rows ordered (spatial p, batch).
    conv3 has a 1x1 output spatial extent, so it reduces over the n_pos conv2
    output positions: expressed as a sum of contiguous row-group matmuls.
    """
    # conv2 (bias + BN folded into w2/s2) + ReLU; bf16 MXU operands, f32 epilogue
    y2 = jnp.dot(p2_ref[...], w2_ref[...], preferred_element_type=jnp.float32)
    y2 = jnp.maximum(y2 + s2_ref[...], 0.0)                    # [n_pos*tb, c2]

    # conv3: accumulate over the n_pos spatial taps; w3 rows ordered (p, c2).
    # TODO(synk): a single [tb, n_pos*c2] @ [n_pos*c2, c3] matmul would fill the
    # MXU better but needs an in-kernel lane-widening reshape of y2 (lane-sparse
    # c2=32); kept as contiguous row-group matmuls with f32 accumulation.
    w3 = w3_ref[...]
    acc = jnp.dot(y2[0:tb, :].astype(jnp.bfloat16), w3[0:c2, :],
                  preferred_element_type=jnp.float32)
    for p in range(1, n_pos):
        acc = acc + jnp.dot(y2[p * tb:(p + 1) * tb, :].astype(jnp.bfloat16),
                            w3[p * c2:(p + 1) * c2, :],
                            preferred_element_type=jnp.float32)
    y3 = jnp.maximum(acc + s3_ref[...], 0.0)                   # [tb, c3] f32

    # fc1 + ReLU  (PyTorch NCHW flatten is trivial: conv3 spatial is 1x1)
    h = jnp.dot(y3.astype(jnp.bfloat16), wf1_ref[...],
                preferred_element_type=jnp.float32)
    h = jnp.maximum(h + b1_ref[...], 0.0)                      # [tb, FC_SIZE]

    # fc2 (no ReLU), kept fully f32 for exact Q-value ordering; lane-padded slab
    q = jnp.dot(h, wf2_ref[...], preferred_element_type=jnp.float32)
    o_ref[...] = (q + b2_ref[...]).astype(o_ref.dtype)


def dqn_tail(p2_alt, w2, s2, w3, s3, wf1, b1, wf2, b2, *, tb, n_pos, n_actions):
    M2, K2 = p2_alt.shape
    c2, c3, fc, n_pad = w2.shape[1], w3.shape[1], wf1.shape[1], wf2.shape[1]
    G = M2 // (n_pos * tb)
    b_pad = G * tb
    flops = 2 * (M2 * K2 * c2 + b_pad * n_pos * c2 * c3
                 + b_pad * c3 * fc + b_pad * fc * n_actions)
    bytes_accessed = sum(int(a.size) * a.dtype.itemsize
                         for a in (p2_alt, w2, s2, w3, s3, wf1, b1, wf2, b2))
    bytes_accessed += b_pad * n_pad * 4
    cost = pl.CostEstimate(flops=int(flops), transcendentals=0,
                           bytes_accessed=int(bytes_accessed))
    return pl.pallas_call(
        functools.partial(dqn_tail_kernel, tb=tb, n_pos=n_pos, c2=c2),
        out_shape=jax.ShapeDtypeStruct((b_pad, n_pad), jnp.float32),
        grid=(G,),
        in_specs=[
            pl.BlockSpec((n_pos * tb, K2), lambda g: (g, 0)),
            pl.BlockSpec(w2.shape, lambda g: (0, 0)),
            pl.BlockSpec(s2.shape, lambda g: (0, 0)),
            pl.BlockSpec(w3.shape, lambda g: (0, 0)),
            pl.BlockSpec(s3.shape, lambda g: (0, 0)),
            pl.BlockSpec(wf1.shape, lambda g: (0, 0)),
            pl.BlockSpec(b1.shape, lambda g: (0, 0)),
            pl.BlockSpec(wf2.shape, lambda g: (0, 0)),
            pl.BlockSpec(b2.shape, lambda g: (0, 0)),
        ],
        out_specs=pl.BlockSpec((tb, n_pad), lambda g: (g, 0)),
        compiler_params=pltpu.CompilerParams(
            dimension_semantics=("parallel",)),
        cost_estimate=cost,
    )(p2_alt, w2, s2, w3, s3, wf1, b1, wf2, b2)


# ------------------------------ im2col (glue) ---------------------------------
def im2col(x_nhwc, ksize, stride, channels=None):
    """[B, H, W, C] -> patches [B*OH*OW, KH*KW*channels] in (KH, KW, C) order.

    `channels` lets a lane-padded activation slab feed the gather directly
    (the valid-channel slice is folded into the patch slicing).
    """
    B, H, W, C = x_nhwc.shape
    if channels is None:
        channels = C
    OH = (H - ksize) // stride + 1
    OW = (W - ksize) // stride + 1
    cols = []
    for i in range(ksize):
        for j in range(ksize):
            cols.append(x_nhwc[:, i:i + stride * OH:stride,
                               j:j + stride * OW:stride, :channels])
    patches = jnp.concatenate(cols, axis=-1)                   # (kh, kw, c) order
    return patches.reshape(B * OH * OW, ksize * ksize * channels), (B, OH, OW)


# ------------------------- parameter initialization ----------------------------
def kaiming_normal(key, shape, fan_in):
    std = math.sqrt(2.0 / fan_in)
    return std * jax.random.normal(key, shape, dtype=jnp.float32)


def xavier_uniform(key, shape):
    fan_out, fan_in = shape
    limit = math.sqrt(6.0 / (fan_in + fan_out))
    return jax.random.uniform(key, shape, minval=-limit, maxval=limit, dtype=jnp.float32)


def init_params(key, input_shape, n_actions):
    c, h, w = input_shape
    k1, k2, k3, k4, k5 = jax.random.split(key, 5)

    params = {}
    # conv weights in PyTorch layout [OC, IC, KH, KW]; bias = 0
    params["conv1_w"] = kaiming_normal(
        k1, (CONV1_CHANNELS, c, CONV1_KERNEL_SIZE, CONV1_KERNEL_SIZE),
        c * CONV1_KERNEL_SIZE ** 2)
    params["conv1_b"] = jnp.zeros((CONV1_CHANNELS,), jnp.float32)
    params["conv2_w"] = kaiming_normal(
        k2, (CONV2_CHANNELS, CONV1_CHANNELS, CONV2_KERNEL_SIZE, CONV2_KERNEL_SIZE),
        CONV1_CHANNELS * CONV2_KERNEL_SIZE ** 2)
    params["conv2_b"] = jnp.zeros((CONV2_CHANNELS,), jnp.float32)
    params["conv3_w"] = kaiming_normal(
        k3, (CONV3_CHANNELS, CONV2_CHANNELS, CONV3_KERNEL_SIZE, CONV3_KERNEL_SIZE),
        CONV2_CHANNELS * CONV3_KERNEL_SIZE ** 2)
    params["conv3_b"] = jnp.zeros((CONV3_CHANNELS,), jnp.float32)

    # BatchNorm params (PyTorch defaults): gamma=1, beta=0, running stats 0/1
    for name, ch in (("bn1", CONV1_CHANNELS), ("bn2", CONV2_CHANNELS), ("bn3", CONV3_CHANNELS)):
        params[f"{name}_gamma"] = jnp.ones((ch,), jnp.float32)
        params[f"{name}_beta"] = jnp.zeros((ch,), jnp.float32)
        params[f"{name}_mean"] = jnp.zeros((ch,), jnp.float32)
        params[f"{name}_var"] = jnp.ones((ch,), jnp.float32)

    # conv output size
    oh = (h - CONV1_KERNEL_SIZE) // CONV1_STRIDE + 1
    ow = (w - CONV1_KERNEL_SIZE) // CONV1_STRIDE + 1
    oh = (oh - CONV2_KERNEL_SIZE) // CONV2_STRIDE + 1
    ow = (ow - CONV2_KERNEL_SIZE) // CONV2_STRIDE + 1
    oh = (oh - CONV3_KERNEL_SIZE) // CONV3_STRIDE + 1
    ow = (ow - CONV3_KERNEL_SIZE) // CONV3_STRIDE + 1
    conv_out = CONV3_CHANNELS * oh * ow

    # fc weights in PyTorch layout [out_features, in_features]
    params["fc1_w"] = kaiming_normal(k4, (FC_SIZE, conv_out), conv_out)
    params["fc1_b"] = jnp.zeros((FC_SIZE,), jnp.float32)
    params["fc2_w"] = xavier_uniform(k5, (n_actions, FC_SIZE))
    params["fc2_b"] = jnp.zeros((n_actions,), jnp.float32)
    return params


# ----------------------- inference-time parameter prep -------------------------
def prepare_inference_params(params):
    """Fold conv bias + eval-mode BN into (weight scale, shift); reorder/pad for TPU.

    Runs ONCE at setup time (hoisted out of the jitted inference path).
    """
    def bn_fold(w_oihw, b, gamma, beta, mean, var):
        scale = gamma / jnp.sqrt(var + BN_EPS)                         # [OC]
        oc = w_oihw.shape[0]
        # (OC, IC, KH, KW) -> (KH, KW, IC, OC): rows match im2col (KH, KW, C) order
        w2d = jnp.transpose(w_oihw, (2, 3, 1, 0)).reshape(-1, oc)
        return w2d * scale[None, :], (b - mean) * scale + beta

    w1, s1 = bn_fold(params["conv1_w"], params["conv1_b"], params["bn1_gamma"],
                     params["bn1_beta"], params["bn1_mean"], params["bn1_var"])
    w2, s2 = bn_fold(params["conv2_w"], params["conv2_b"], params["bn2_gamma"],
                     params["bn2_beta"], params["bn2_mean"], params["bn2_var"])
    w3, s3 = bn_fold(params["conv3_w"], params["conv3_b"], params["bn3_gamma"],
                     params["bn3_beta"], params["bn3_mean"], params["bn3_var"])

    # conv1 output channels padded to a full 128-lane slab (unmasked stores)
    pad1 = _round_up(CONV1_CHANNELS, LANE) - CONV1_CHANNELS
    w1 = jnp.pad(w1, ((0, 0), (0, pad1)))
    s1 = jnp.pad(s1, (0, pad1))

    # fc weights: PyTorch [out, in] -> [in, out]; fc2 padded to 128 output lanes
    n_actions = params["fc2_w"].shape[0]
    pad_a = _round_up(n_actions, LANE) - n_actions
    wf1 = params["fc1_w"].T
    wf2 = jnp.pad(params["fc2_w"].T, ((0, 0), (0, pad_a)))
    b2 = jnp.pad(params["fc2_b"], (0, pad_a))

    f32 = jnp.float32
    bf16 = jnp.bfloat16
    return {
        # bf16 MXU operands; f32 shifts/biases (epilogue math stays f32)
        "w1": w1.astype(bf16), "s1": s1.reshape(1, -1).astype(f32),
        "w2": w2.astype(bf16), "s2": s2.reshape(1, -1).astype(f32),
        "w3": w3.astype(bf16), "s3": s3.reshape(1, -1).astype(f32),
        "wf1": wf1.astype(bf16), "b1": params["fc1_b"].reshape(1, -1).astype(f32),
        # fc2 kept fully f32 for exact Q-value precision/ordering
        "wf2": wf2.astype(f32), "b2": b2.reshape(1, -1).astype(f32),
    }


# --------------------------------- forward ------------------------------------
def dqn_forward(prep, x_nchw, *, n_actions):
    """prep: pre-folded/padded params from prepare_inference_params (computed once)."""
    B = x_nchw.shape[0]

    # NHWC + bf16 BEFORE im2col: the conv1 patch matrix (largest XLA-side
    # intermediate) is built and consumed in bf16.
    x = jnp.transpose(x_nchw, (0, 2, 3, 1)).astype(jnp.bfloat16)

    # conv1 + BN + ReLU (Pallas kernel 1, bf16 MXU, lane-padded bf16 output)
    p1, (_, OH1, OW1) = im2col(x, CONV1_KERNEL_SIZE, CONV1_STRIDE)
    y1 = affine_matmul(p1, prep["w1"], prep["s1"], apply_relu=True,
                       n_valid=CONV1_CHANNELS, out_dtype=jnp.bfloat16)
    # lane-padded slab -> NHWC view (free reshape); the :16 channel slice is
    # folded into the conv2 im2col gather below.
    y1 = y1.reshape(B, OH1, OW1, LANE)

    # conv2 im2col in XLA (cheap strided gather on a few-KiB bf16 activation)
    p2, (_, OH2, OW2) = im2col(y1, CONV2_KERNEL_SIZE, CONV2_STRIDE,
                               channels=CONV1_CHANNELS)
    n_pos = OH2 * OW2
    K2 = p2.shape[1]

    # The fused tail kernel requires conv3 to cover the full conv2 output
    # (1x1 conv3 output spatial), which holds for this configuration.
    # TODO(synk): for general conv3 spatial sizes the NCHW flatten between conv3
    # and fc1 would need to be hoisted back out of the fused kernel.
    oh3 = (OH2 - CONV3_KERNEL_SIZE) // CONV3_STRIDE + 1
    ow3 = (OW2 - CONV3_KERNEL_SIZE) // CONV3_STRIDE + 1
    assert oh3 == 1 and ow3 == 1
    assert OH2 == CONV3_KERNEL_SIZE and OW2 == CONV3_KERNEL_SIZE

    # Batch tile: large enough to amortize the ~0.35us/step grid overhead and
    # fill the MXU M dimension, capped at 128 so large batches still give >=2
    # grid steps (v7x dual TensorCore) and the double-buffered p2 block stays
    # far under VMEM limits on every generation (incl. v7x's 64 MiB).
    TB = max(SUBLANE, min(128, _round_up(B, SUBLANE)))
    B_pad = _round_up(B, TB)
    G = B_pad // TB
    # reorder patch rows (b, p) -> (batch_block, p, b_local) so the tail kernel's
    # conv3 reduction only needs contiguous row groups.
    p2 = p2.reshape(B, n_pos, K2)
    p2 = jnp.pad(p2, ((0, B_pad - B), (0, 0), (0, 0)))
    p2 = p2.reshape(G, TB, n_pos, K2).transpose(0, 2, 1, 3).reshape(G * n_pos * TB, K2)

    # conv2 + conv3 + fc1 + fc2 fused in one Pallas kernel; lane-padded Q slab
    q_pad = dqn_tail(p2, prep["w2"], prep["s2"], prep["w3"], prep["s3"],
                     prep["wf1"], prep["b1"], prep["wf2"], prep["b2"],
                     tb=TB, n_pos=n_pos, n_actions=n_actions)
    return q_pad[:B, :n_actions]


# ----------------------------------- main --------------------------------------
if __name__ == "__main__":
    key = jax.random.PRNGKey(0)
    kp, kx = jax.random.split(key)

    input_shape = (4, 36, 36)   # (C, H, W) -> conv stack yields 32*1*1 features
    n_actions = 6
    batch = 2

    params = init_params(kp, input_shape, n_actions)

    # Parameter prep (BN fold, transposes, pads, bf16 casts) runs once, eagerly,
    # outside the jitted inference path.
    prep = prepare_inference_params(params)
    prep = jax.tree_util.tree_map(jax.block_until_ready, prep)

    x = jax.random.normal(kx, (batch,) + input_shape, dtype=jnp.float32)  # NCHW

    fwd = jax.jit(functools.partial(dqn_forward, n_actions=n_actions))
    q_values = jax.block_until_ready(fwd(prep, x))

    assert q_values.shape == (batch, n_actions), q_values.shape
    assert q_values.dtype == jnp.float32
    assert bool(jnp.all(jnp.isfinite(q_values)))
    print("KERNEL_OK")
</pallas_src>

<mosaic_0001>
module attributes {stable_mosaic.version = 11 : i64} {
  func.func @affine_matmul_kernel(%arg0: i32, %arg1: memref<128x256xbf16, #tpu.memory_space<vmem>>, %arg2: memref<256x128xbf16, #tpu.memory_space<vmem>>, %arg3: memref<1x128xf32, #tpu.memory_space<vmem>>, %arg4: memref<128x128xbf16, #tpu.memory_space<vmem>>) attributes {dimension_semantics = [#tpu.dimension_semantics<parallel>], iteration_bounds = array<i64: 1>, scalar_prefetch = 0 : i64, scratch_operands = 0 : i64, tpu.core_type = #tpu.core_type<tc>, window_params = [{transform_indices = @transform_0, window_bounds = array<i64: 128, 256>}, {pipeline_mode = #tpu.pipeline_mode<synchronous>, transform_indices = @transform_1, window_bounds = array<i64: 256, 128>}, {pipeline_mode = #tpu.pipeline_mode<synchronous>, transform_indices = @transform_2, window_bounds = array<i64: 1, 128>}, {transform_indices = @transform_3, window_bounds = array<i64: 128, 128>}]} {
    %c0 = arith.constant 0 : index
    %c0_0 = arith.constant 0 : index
    %0 = vector.load %arg1[%c0, %c0_0] : memref<128x256xbf16, #tpu.memory_space<vmem>>, vector<128x256xbf16>
    %c0_1 = arith.constant 0 : index
    %c0_2 = arith.constant 0 : index
    %1 = vector.load %arg2[%c0_1, %c0_2] : memref<256x128xbf16, #tpu.memory_space<vmem>>, vector<256x128xbf16>
    %cst = arith.constant dense<0.000000e+00> : vector<128x128xf32>
    %2 = tpu.matmul %0, %1, %cst {dimension_numbers = #tpu.dot_dimension_numbers<[1], [0], [0], [1], [0, 0, 1, 1], [], []>} : vector<128x256xbf16>, vector<256x128xbf16>, vector<128x128xf32> -> vector<128x128xf32>
    %c0_3 = arith.constant 0 : index
    %c0_4 = arith.constant 0 : index
    %3 = vector.load %arg3[%c0_3, %c0_4] : memref<1x128xf32, #tpu.memory_space<vmem>>, vector<1x128xf32>
    %4 = vector.broadcast %3 : vector<1x128xf32> to vector<128x128xf32>
    %5 = arith.addf %2, %4 : vector<128x128xf32>
    %cst_5 = arith.constant 0.000000e+00 : f32
    %6 = vector.broadcast %cst_5 : f32 to vector<128x128xf32>
    %7 = arith.maximumf %5, %6 : vector<128x128xf32>
    %8 = arith.truncf %7 : vector<128x128xf32> to vector<128x128xbf16>
    %c0_6 = arith.constant 0 : index
    %c0_7 = arith.constant 0 : index
    %9 = vector.load %arg4[%c0_6, %c0_7] : memref<128x128xbf16, #tpu.memory_space<vmem>>, vector<128x128xbf16>
    tpu.vector_store %arg4[%c0_6, %c0_7], %8 {strides = array<i32>} : memref<128x128xbf16, #tpu.memory_space<vmem>>, vector<128x128xbf16>,
    return
  }
  func.func @transform_0(%arg0: i32) -> (i32, i32) {
    %c0_i32 = arith.constant 0 : i32
    %c0_i32_0 = arith.constant 0 : i32
    return %arg0, %c0_i32 : i32, i32
  }
  func.func @transform_1(%arg0: i32) -> (i32, i32) {
    %c0_i32 = arith.constant 0 : i32
    %c0_i32_0 = arith.constant 0 : i32
    %c0_i32_1 = arith.constant 0 : i32
    return %c0_i32, %c0_i32_0 : i32, i32
  }
  func.func @transform_2(%arg0: i32) -> (i32, i32) {
    %c0_i32 = arith.constant 0 : i32
    %c0_i32_0 = arith.constant 0 : i32
    %c0_i32_1 = arith.constant 0 : i32
    return %c0_i32, %c0_i32_0 : i32, i32
  }
  func.func @transform_3(%arg0: i32) -> (i32, i32) {
    %c0_i32 = arith.constant 0 : i32
    %c0_i32_0 = arith.constant 0 : i32
    return %arg0, %c0_i32 : i32, i32
  }
}

module attributes {stable_mosaic.version = 11 : i64} {
  func.func @dqn_tail_kernel(%arg0: i32, %arg1: memref<72x256xbf16, #tpu.memory_space<vmem>>, %arg2: memref<256x32xbf16, #tpu.memory_space<vmem>>, %arg3: memref<1x32xf32, #tpu.memory_space<vmem>>, %arg4: memref<288x32xbf16, #tpu.memory_space<vmem>>, %arg5: memref<1x32xf32, #tpu.memory_space<vmem>>, %arg6: memref<32x128xbf16, #tpu.memory_space<vmem>>, %arg7: memref<1x128xf32, #tpu.memory_space<vmem>>, %arg8: memref<128x128xf32, #tpu.memory_space<vmem>>, %arg9: memref<1x128xf32, #tpu.memory_space<vmem>>, %arg10: memref<8x128xf32, #tpu.memory_space<vmem>>) attributes {dimension_semantics = [#tpu.dimension_semantics<parallel>], iteration_bounds = array<i64: 1>, scalar_prefetch = 0 : i64, scratch_operands = 0 : i64, tpu.core_type = #tpu.core_type<tc>, window_params = [{transform_indices = @transform_0, window_bounds = array<i64: 72, 256>}, {pipeline_mode = #tpu.pipeline_mode<synchronous>, transform_indices = @transform_1, window_bounds = array<i64: 256, 32>}, {pipeline_mode = #tpu.pipeline_mode<synchronous>, transform_indices = @transform_2, window_bounds = array<i64: 1, 32>}, {pipeline_mode = #tpu.pipeline_mode<synchronous>, transform_indices = @transform_3, window_bounds = array<i64: 288, 32>}, {pipeline_mode = #tpu.pipeline_mode<synchronous>, transform_indices = @transform_4, window_bounds = array<i64: 1, 32>}, {pipeline_mode = #tpu.pipeline_mode<synchronous>, transform_indices = @transform_5, window_bounds = array<i64: 32, 128>}, {pipeline_mode = #tpu.pipeline_mode<synchronous>, transform_indices = @transform_6, window_bounds = array<i64: 1, 128>}, {pipeline_mode = #tpu.pipeline_mode<synchronous>, transform_indices = @transform_7, window_bounds = array<i64: 128, 128>}, {pipeline_mode = #tpu.pipeline_mode<synchronous>, transform_indices = @transform_8, window_bounds = array<i64: 1, 128>}, {transform_indices = @transform_9, window_bounds = array<i64: 8, 128>}]} {
    %c0 = arith.constant 0 : index
    %c0_0 = arith.constant 0 : index
    %0 = vector.load %arg1[%c0, %c0_0] : memref<72x256xbf16, #tpu.memory_space<vmem>>, vector<72x256xbf16>
    %c0_1 = arith.constant 0 : index
    %c0_2 = arith.constant 0 : index
    %1 = vector.load %arg2[%c0_1, %c0_2] : memref<256x32xbf16, #tpu.memory_space<vmem>>, vector<256x32xbf16>
    %cst = arith.constant dense<0.000000e+00> : vector<72x32xf32>
    %2 = tpu.matmul %0, %1, %cst {dimension_numbers = #tpu.dot_dimension_numbers<[1], [0], [0], [1], [0, 0, 1, 1], [], []>} : vector<72x256xbf16>, vector<256x32xbf16>, vector<72x32xf32> -> vector<72x32xf32>
    %c0_3 = arith.constant 0 : index
    %c0_4 = arith.constant 0 : index
    %3 = vector.load %arg3[%c0_3, %c0_4] : memref<1x32xf32, #tpu.memory_space<vmem>>, vector<1x32xf32>
    %4 = vector.broadcast %3 : vector<1x32xf32> to vector<72x32xf32>
    %5 = arith.addf %2, %4 : vector<72x32xf32>
    %cst_5 = arith.constant 0.000000e+00 : f32
    %6 = vector.broadcast %cst_5 : f32 to vector<72x32xf32>
    %7 = arith.maximumf %5, %6 : vector<72x32xf32>
    %c0_6 = arith.constant 0 : index
    %c0_7 = arith.constant 0 : index
    %8 = vector.load %arg4[%c0_6, %c0_7] : memref<288x32xbf16, #tpu.memory_space<vmem>>, vector<288x32xbf16>
    %9 = vector.extract_strided_slice %7 {offsets = [0, 0], sizes = [8, 32], strides = [1, 1]} : vector<72x32xf32> to vector<8x32xf32>
    %10 = arith.truncf %9 : vector<8x32xf32> to vector<8x32xbf16>
    %11 = vector.extract_strided_slice %8 {offsets = [0, 0], sizes = [32, 32], strides = [1, 1]} : vector<288x32xbf16> to vector<32x32xbf16>
    %cst_8 = arith.constant dense<0.000000e+00> : vector<8x32xf32>
    %12 = tpu.matmul %10, %11, %cst_8 {dimension_numbers = #tpu.dot_dimension_numbers<[1], [0], [0], [1], [0, 0, 1, 1], [], []>} : vector<8x32xbf16>, vector<32x32xbf16>, vector<8x32xf32> -> vector<8x32xf32>
    %13 = vector.extract_strided_slice %7 {offsets = [8, 0], sizes = [8, 32], strides = [1, 1]} : vector<72x32xf32> to vector<8x32xf32>
    %14 = arith.truncf %13 : vector<8x32xf32> to vector<8x32xbf16>
    %15 = vector.extract_strided_slice %8 {offsets = [32, 0], sizes = [32, 32], strides = [1, 1]} : vector<288x32xbf16> to vector<32x32xbf16>
    %cst_9 = arith.constant dense<0.000000e+00> : vector<8x32xf32>
    %16 = tpu.matmul %14, %15, %cst_9 {dimension_numbers = #tpu.dot_dimension_numbers<[1], [0], [0], [1], [0, 0, 1, 1], [], []>} : vector<8x32xbf16>, vector<32x32xbf16>, vector<8x32xf32> -> vector<8x32xf32>
    %17 = arith.addf %12, %16 : vector<8x32xf32>
    %18 = vector.extract_strided_slice %7 {offsets = [16, 0], sizes = [8, 32], strides = [1, 1]} : vector<72x32xf32> to vector<8x32xf32>
    %19 = arith.truncf %18 : vector<8x32xf32> to vector<8x32xbf16>
    %20 = vector.extract_strided_slice %8 {offsets = [64, 0], sizes = [32, 32], strides = [1, 1]} : vector<288x32xbf16> to vector<32x32xbf16>
    %cst_10 = arith.constant dense<0.000000e+00> : vector<8x32xf32>
    %21 = tpu.matmul %19, %20, %cst_10 {dimension_numbers = #tpu.dot_dimension_numbers<[1], [0], [0], [1], [0, 0, 1, 1], [], []>} : vector<8x32xbf16>, vector<32x32xbf16>, vector<8x32xf32> -> vector<8x32xf32>
    %22 = arith.addf %17, %21 : vector<8x32xf32>
    %23 = vector.extract_strided_slice %7 {offsets = [24, 0], sizes = [8, 32], strides = [1, 1]} : vector<72x32xf32> to vector<8x32xf32>
    %24 = arith.truncf %23 : vector<8x32xf32> to vector<8x32xbf16>
    %25 = vector.extract_strided_slice %8 {offsets = [96, 0], sizes = [32, 32], strides = [1, 1]} : vector<288x32xbf16> to vector<32x32xbf16>
    %cst_11 = arith.constant dense<0.000000e+00> : vector<8x32xf32>
    %26 = tpu.matmul %24, %25, %cst_11 {dimension_numbers = #tpu.dot_dimension_numbers<[1], [0], [0], [1], [0, 0, 1, 1], [], []>} : vector<8x32xbf16>, vector<32x32xbf16>, vector<8x32xf32> -> vector<8x32xf32>
    %27 = arith.addf %22, %26 : vector<8x32xf32>
    %28 = vector.extract_strided_slice %7 {offsets = [32, 0], sizes = [8, 32], strides = [1, 1]} : vector<72x32xf32> to vector<8x32xf32>
    %29 = arith.truncf %28 : vector<8x32xf32> to vector<8x32xbf16>
    %30 = vector.extract_strided_slice %8 {offsets = [128, 0], sizes = [32, 32], strides = [1, 1]} : vector<288x32xbf16> to vector<32x32xbf16>
    %cst_12 = arith.constant dense<0.000000e+00> : vector<8x32xf32>
    %31 = tpu.matmul %29, %30, %cst_12 {dimension_numbers = #tpu.dot_dimension_numbers<[1], [0], [0], [1], [0, 0, 1, 1], [], []>} : vector<8x32xbf16>, vector<32x32xbf16>, vector<8x32xf32> -> vector<8x32xf32>
    %32 = arith.addf %27, %31 : vector<8x32xf32>
    %33 = vector.extract_strided_slice %7 {offsets = [40, 0], sizes = [8, 32], strides = [1, 1]} : vector<72x32xf32> to vector<8x32xf32>
    %34 = arith.truncf %33 : vector<8x32xf32> to vector<8x32xbf16>
    %35 = vector.extract_strided_slice %8 {offsets = [160, 0], sizes = [32, 32], strides = [1, 1]} : vector<288x32xbf16> to vector<32x32xbf16>
    %cst_13 = arith.constant dense<0.000000e+00> : vector<8x32xf32>
    %36 = tpu.matmul %34, %35, %cst_13 {dimension_numbers = #tpu.dot_dimension_numbers<[1], [0], [0], [1], [0, 0, 1, 1], [], []>} : vector<8x32xbf16>, vector<32x32xbf16>, vector<8x32xf32> -> vector<8x32xf32>
    %37 = arith.addf %32, %36 : vector<8x32xf32>
    %38 = vector.extract_strided_slice %7 {offsets = [48, 0], sizes = [8, 32], strides = [1, 1]} : vector<72x32xf32> to vector<8x32xf32>
    %39 = arith.truncf %38 : vector<8x32xf32> to vector<8x32xbf16>
    %40 = vector.extract_strided_slice %8 {offsets = [192, 0], sizes = [32, 32], strides = [1, 1]} : vector<288x32xbf16> to vector<32x32xbf16>
    %cst_14 = arith.constant dense<0.000000e+00> : vector<8x32xf32>
    %41 = tpu.matmul %39, %40, %cst_14 {dimension_numbers = #tpu.dot_dimension_numbers<[1], [0], [0], [1], [0, 0, 1, 1], [], []>} : vector<8x32xbf16>, vector<32x32xbf16>, vector<8x32xf32> -> vector<8x32xf32>
    %42 = arith.addf %37, %41 : vector<8x32xf32>
    %43 = vector.extract_strided_slice %7 {offsets = [56, 0], sizes = [8, 32], strides = [1, 1]} : vector<72x32xf32> to vector<8x32xf32>
    %44 = arith.truncf %43 : vector<8x32xf32> to vector<8x32xbf16>
    %45 = vector.extract_strided_slice %8 {offsets = [224, 0], sizes = [32, 32], strides = [1, 1]} : vector<288x32xbf16> to vector<32x32xbf16>
    %cst_15 = arith.constant dense<0.000000e+00> : vector<8x32xf32>
    %46 = tpu.matmul %44, %45, %cst_15 {dimension_numbers = #tpu.dot_dimension_numbers<[1], [0], [0], [1], [0, 0, 1, 1], [], []>} : vector<8x32xbf16>, vector<32x32xbf16>, vector<8x32xf32> -> vector<8x32xf32>
    %47 = arith.addf %42, %46 : vector<8x32xf32>
    %48 = vector.extract_strided_slice %7 {offsets = [64, 0], sizes = [8, 32], strides = [1, 1]} : vector<72x32xf32> to vector<8x32xf32>
    %49 = arith.truncf %48 : vector<8x32xf32> to vector<8x32xbf16>
    %50 = vector.extract_strided_slice %8 {offsets = [256, 0], sizes = [32, 32], strides = [1, 1]} : vector<288x32xbf16> to vector<32x32xbf16>
    %cst_16 = arith.constant dense<0.000000e+00> : vector<8x32xf32>
    %51 = tpu.matmul %49, %50, %cst_16 {dimension_numbers = #tpu.dot_dimension_numbers<[1], [0], [0], [1], [0, 0, 1, 1], [], []>} : vector<8x32xbf16>, vector<32x32xbf16>, vector<8x32xf32> -> vector<8x32xf32>
    %52 = arith.addf %47, %51 : vector<8x32xf32>
    %c0_17 = arith.constant 0 : index
    %c0_18 = arith.constant 0 : index
    %53 = vector.load %arg5[%c0_17, %c0_18] : memref<1x32xf32, #tpu.memory_space<vmem>>, vector<1x32xf32>
    %54 = vector.broadcast %53 : vector<1x32xf32> to vector<8x32xf32>
    %55 = arith.addf %52, %54 : vector<8x32xf32>
    %cst_19 = arith.constant 0.000000e+00 : f32
    %56 = vector.broadcast %cst_19 : f32 to vector<8x32xf32>
    %57 = arith.maximumf %55, %56 : vector<8x32xf32>
    %58 = arith.truncf %57 : vector<8x32xf32> to vector<8x32xbf16>
    %c0_20 = arith.constant 0 : index
    %c0_21 = arith.constant 0 : index
    %59 = vector.load %arg6[%c0_20, %c0_21] : memref<32x128xbf16, #tpu.memory_space<vmem>>, vector<32x128xbf16>
    %cst_22 = arith.constant dense<0.000000e+00> : vector<8x128xf32>
    %60 = tpu.matmul %58, %59, %cst_22 {dimension_numbers = #tpu.dot_dimension_numbers<[1], [0], [0], [1], [0, 0, 1, 1], [], []>} : vector<8x32xbf16>, vector<32x128xbf16>, vector<8x128xf32> -> vector<8x128xf32>
    %c0_23 = arith.constant 0 : index
    %c0_24 = arith.constant 0 : index
    %61 = vector.load %arg7[%c0_23, %c0_24] : memref<1x128xf32, #tpu.memory_space<vmem>>, vector<1x128xf32>
    %62 = vector.broadcast %61 : vector<1x128xf32> to vector<8x128xf32>
    %63 = arith.addf %60, %62 : vector<8x128xf32>
    %cst_25 = arith.constant 0.000000e+00 : f32
    %64 = vector.broadcast %cst_25 : f32 to vector<8x128xf32>
    %65 = arith.maximumf %63, %64 : vector<8x128xf32>
    %c0_26 = arith.constant 0 : index
    %c0_27 = arith.constant 0 : index
    %66 = vector.load %arg8[%c0_26, %c0_27] : memref<128x128xf32, #tpu.memory_space<vmem>>, vector<128x128xf32>
    %cst_28 = arith.constant dense<0.000000e+00> : vector<8x128xf32>
    %67 = tpu.matmul %65, %66, %cst_28 {dimension_numbers = #tpu.dot_dimension_numbers<[1], [0], [0], [1], [0, 0, 1, 1], [], []>} : vector<8x128xf32>, vector<128x128xf32>, vector<8x128xf32> -> vector<8x128xf32>
    %c0_29 = arith.constant 0 : index
    %c0_30 = arith.constant 0 : index
    %68 = vector.load %arg9[%c0_29, %c0_30] : memref<1x128xf32, #tpu.memory_space<vmem>>, vector<1x128xf32>
    %69 = vector.broadcast %68 : vector<1x128xf32> to vector<8x128xf32>
    %70 = arith.addf %67, %69 : vector<8x128xf32>
    %c0_31 = arith.constant 0 : index
    %c0_32 = arith.constant 0 : index
    %71 = vector.load %arg10[%c0_31, %c0_32] : memref<8x128xf32, #tpu.memory_space<vmem>>, vector<8x128xf32>
    tpu.vector_store %arg10[%c0_31, %c0_32], %70 {strides = array<i32>} : memref<8x128xf32, #tpu.memory_space<vmem>>, vector<8x128xf32>,
    return
  }
  func.func @transform_0(%arg0: i32) -> (i32, i32) {
    %c0_i32 = arith.constant 0 : i32
    %c0_i32_0 = arith.constant 0 : i32
    return %arg0, %c0_i32 : i32, i32
  }
  func.func @transform_1(%arg0: i32) -> (i32, i32) {
    %c0_i32 = arith.constant 0 : i32
    %c0_i32_0 = arith.constant 0 : i32
    %c0_i32_1 = arith.constant 0 : i32
    return %c0_i32, %c0_i32_0 : i32, i32
  }
  func.func @transform_2(%arg0: i32) -> (i32, i32) {
    %c0_i32 = arith.constant 0 : i32
    %c0_i32_0 = arith.constant 0 : i32
    %c0_i32_1 = arith.constant 0 : i32
    return %c0_i32, %c0_i32_0 : i32, i32
  }
  func.func @transform_3(%arg0: i32) -> (i32, i32) {
    %c0_i32 = arith.constant 0 : i32
    %c0_i32_0 = arith.constant 0 : i32
    %c0_i32_1 = arith.constant 0 : i32
    return %c0_i32, %c0_i32_0 : i32, i32
  }
  func.func @transform_4(%arg0: i32) -> (i32, i32) {
    %c0_i32 = arith.constant 0 : i32
    %c0_i32_0 = arith.constant 0 : i32
    %c0_i32_1 = arith.constant 0 : i32
    return %c0_i32, %c0_i32_0 : i32, i32
  }
  func.func @transform_5(%arg0: i32) -> (i32, i32) {
    %c0_i32 = arith.constant 0 : i32
    %c0_i32_0 = arith.constant 0 : i32
    %c0_i32_1 = arith.constant 0 : i32
    return %c0_i32, %c0_i32_0 : i32, i32
  }
  func.func @transform_6(%arg0: i32) -> (i32, i32) {
    %c0_i32 = arith.constant 0 : i32
    %c0_i32_0 = arith.constant 0 : i32
    %c0_i32_1 = arith.constant 0 : i32
    return %c0_i32, %c0_i32_0 : i32, i32
  }
  func.func @transform_7(%arg0: i32) -> (i32, i32) {
    %c0_i32 = arith.constant 0 : i32
    %c0_i32_0 = arith.constant 0 : i32
    %c0_i32_1 = arith.constant 0 : i32
    return %c0_i32, %c0_i32_0 : i32, i32
  }
  func.func @transform_8(%arg0: i32) -> (i32, i32) {
    %c0_i32 = arith.constant 0 : i32
    %c0_i32_0 = arith.constant 0 : i32
    %c0_i32_1 = arith.constant 0 : i32
    return %c0_i32, %c0_i32_0 : i32, i32
  }
  func.func @transform_9(%arg0: i32) -> (i32, i32) {
    %c0_i32 = arith.constant 0 : i32
    %c0_i32_0 = arith.constant 0 : i32
    return %arg0, %c0_i32 : i32, i32
  }
}

</mosaic_0001>

<bundles_post_ra>
// kernel: dqn_forward.2
= control target key start
LH: loop header
LB: loop body
LE: loop exit
PB: predicated region body
PF: predicated region fallthrough
CT: control target
= control target key end

     0   :  { %s836_s1 = inlined_call_operand.vmem [shape: bf16[256,128], index: 1, kind: input, shape index: {}]   ;;  %s837_s0 = inlined_call_operand.vmem [shape: bf16[128,256], index: 0, kind: input, shape index: {}]   ;;  %s838_s2 = inlined_call_operand.vmem [shape: f32[1,128], index: 2, kind: input, shape index: {}]   ;;  %s839_s3 = inlined_call_operand.vmem [shape: bf16[128,128], index: 3, kind: output, shape index: {}]  }
   0x1   :  { %v635_v0 = vld [vmem:[%s836_s1 + $0x78] sm:$0xff]   ;;  %v637_v2 = vld [vmem:[%s836_s1 + $0x70] sm:$0xff]   ;;  %v639_v4 = vld [vmem:[%s836_s1 + $0x68] sm:$0xff]  }
   0x2   :  { %v636_v1 = vld [vmem:[%s836_s1 + $0x38] sm:$0xff]   ;;  %555 = vmatprep.subr.bf16.mxu0 %v635_v0  ;;  %619 = vmatprep.subr.bf16.mxu1 %v635_v0  ;;  %v638_v3 = vld [vmem:[%s836_s1 + $0x30] sm:$0xff]   ;;  %v640_v5 = vld [vmem:[%s836_s1 + $0x28] sm:$0xff]  }
   0x3   :  { %556 = vmatpush3.bf16.msra.mxu0 %v636_v1  ;;  %627 = vmatpush3.bf16.msra.mxu1 %v636_v1  ;;  %v641_v6 = vld [vmem:[%s836_s1 + $0x60] sm:$0xff]   ;;  %v643_v8 = vld [vmem:[%s836_s1 + $0x58] sm:$0xff]   ;;  %v645_v10 = vld [vmem:[%s836_s1 + $0x50] sm:$0xff]  }
   0x4   :  { %557 = vmatprep.subr.bf16.mxu0 %v637_v2  ;;  %620 = vmatprep.subr.bf16.mxu1 %v637_v2  ;;  %v642_v7 = vld [vmem:[%s836_s1 + $0x20] sm:$0xff]   ;;  %v644_v9 = vld [vmem:[%s836_s1 + $0x18] sm:$0xff]   ;;  %v646_v13 = vld [vmem:[%s836_s1 + $0x10] sm:$0xff]  }
   0x5   :  { %v653_v11 = vld [vmem:[%s837_s0 + $0x4] ss:$8 sps:$4 sm:$0xff]   ;;  %v651_v18 = vld [vmem:[%s837_s0] ss:$8 sps:$4 sm:$0xff]   ;;  %v657_v20 = vld [vmem:[%s837_s0 + $0x14] ss:$8 sps:$4 sm:$0xff]  }
   0x6   :  { %v656_v12 = vld [vmem:[%s837_s0 + $0x44] ss:$8 sps:$4 sm:$0xff]   ;;  %278 = vmatprep.mubr.bf16.mxu0 %v653_v11  ;;  %v654_v19 = vld [vmem:[%s837_s0 + $0x40] ss:$8 sps:$4 sm:$0xff]   ;;  %v659_v21 = vld [vmem:[%s837_s0 + $0x54] ss:$8 sps:$4 sm:$0xff]  }
   0x7   :  { %558 = vmatpush3.bf16.msra.mxu0 %v638_v3  ;;  %628 = vmatpush3.bf16.msra.mxu1 %v638_v3  ;;  %v647_v14 = vld [vmem:[%s836_s1 + $0x48] sm:$0xff]   ;;  %v649_v16 = vld [vmem:[%s836_s1 + $0x40] sm:$0xff]   ;;  %v661_v22 = vld [vmem:[%s837_s0 + $0x10] ss:$8 sps:$4 sm:$0xff]  }
   0x8   :  { %559 = vmatprep.subr.bf16.mxu0 %v639_v4  ;;  %621 = vmatprep.subr.bf16.mxu1 %v639_v4  ;;  %v648_v15 = vld [vmem:[%s836_s1 + $0x8] sm:$0xff]   ;;  %v650_v17 = vld [vmem:[%s836_s1] sm:$0xff]   ;;  %v662_v23 = vld [vmem:[%s837_s0 + $0x50] ss:$8 sps:$4 sm:$0xff]  }
   0x9   :  { %310 = vmatprep.mubr.bf16.mxu1 %v656_v12  ;;  %v663_v24 = vld [vmem:[%s837_s0 + $0x24] ss:$8 sps:$4 sm:$0xff]   ;;  %v667_v26 = vld [vmem:[%s837_s0 + $0x20] ss:$8 sps:$4 sm:$0xff]   ;;  %v669_v28 = vld [vmem:[%s837_s0 + $0x34] ss:$8 sps:$4 sm:$0xff]  }
   0xa   :  { %v665_v25 = vld [vmem:[%s837_s0 + $0x64] ss:$8 sps:$4 sm:$0xff]   ;;  %v668_v27 = vld [vmem:[%s837_s0 + $0x60] ss:$8 sps:$4 sm:$0xff]   ;;  %v671_v29 = vld [vmem:[%s837_s0 + $0x74] ss:$8 sps:$4 sm:$0xff]  }
   0xb   :  { %560 = vmatpush3.bf16.msra.mxu0 %v640_v5  ;;  %629 = vmatpush3.bf16.msra.mxu1 %v640_v5  ;;  %v673_v30 = vld [vmem:[%s837_s0 + $0x30] ss:$8 sps:$4 sm:$0xff]   ;;  %v794_v36 = vld [vmem:[%s838_s2] ss:$0 sm:$0xff] }
   0xc   :  { %561 = vmatprep.subr.bf16.mxu0 %v641_v6  ;;  %622 = vmatprep.subr.bf16.mxu1 %v641_v6  ;;  %v674_v31 = vld [vmem:[%s837_s0 + $0x70] ss:$8 sps:$4 sm:$0xff]  }
   0xf   :  { %562 = vmatpush3.bf16.msra.mxu0 %v642_v7  ;;  %630 = vmatpush3.bf16.msra.mxu1 %v642_v7 }
  0x10   :  { %563 = vmatprep.subr.bf16.mxu0 %v643_v8  ;;  %623 = vmatprep.subr.bf16.mxu1 %v643_v8 }
  0x13   :  { %564 = vmatpush3.bf16.msra.mxu0 %v644_v9  ;;  %631 = vmatpush3.bf16.msra.mxu1 %v644_v9 }
  0x14   :  { %565 = vmatprep.subr.bf16.mxu0 %v645_v10  ;;  %624 = vmatprep.subr.bf16.mxu1 %v645_v10 }
  0x17   :  { %566 = vmatpush3.bf16.msra.mxu0 %v646_v13  ;;  %632 = vmatpush3.bf16.msra.mxu1 %v646_v13 }
  0x18   :  { %567 = vmatprep.subr.bf16.mxu0 %v647_v14  ;;  %625 = vmatprep.subr.bf16.mxu1 %v647_v14 }
  0x1b   :  { %568 = vmatpush3.bf16.msra.mxu0 %v648_v15  ;;  %633 = vmatpush3.bf16.msra.mxu1 %v648_v15 }
  0x1c   :  { %569 = vmatprep.subr.bf16.mxu0 %v649_v16  ;;  %626 = vmatprep.subr.bf16.mxu1 %v649_v16 }
  0x1f   :  { %570 = vmatpush3.bf16.msra.mxu0 %v650_v17  ;;  %634 = vmatpush3.bf16.msra.mxu1 %v650_v17 }
  0x22   :  { %279 = vmatmul.mubr.bf16.vlgmr.msra.gmra.mxu0 %v651_v18  ;;  %311 = vmatmul.mubr.bf16.vlgmr.msra.gmra.mxu1 %v654_v19 }
  0x23   :  { %286 = vmatprep.mubr.bf16.mxu0 %v657_v20  ;;  %318 = vmatprep.mubr.bf16.mxu1 %v659_v21 }
  0x2a   :  { %287 = vmatmul.mubr.bf16.gmra.mxu0 %v661_v22  ;;  %319 = vmatmul.mubr.bf16.gmra.mxu1 %v662_v23 }
  0x2b   :  { %294 = vmatprep.mubr.bf16.mxu0 %v663_v24  ;;  %326 = vmatprep.mubr.bf16.mxu1 %v665_v25 }
  0x32   :  { %295 = vmatmul.mubr.bf16.gmra.mxu0 %v667_v26  ;;  %327 = vmatmul.mubr.bf16.gmra.mxu1 %v668_v27 }
  0x33   :  { %302 = vmatprep.mubr.bf16.mxu0 %v669_v28  ;;  %334 = vmatprep.mubr.bf16.mxu1 %v671_v29 }
  0x3a   :  { %303 = vmatmul.mubr.bf16.gmra.mxu0 %v673_v30  ;;  %335 = vmatmul.mubr.bf16.gmra.mxu1 %v674_v31 }
  0xe2   :  { %v571_v32 = vpop.f32.mrf.mxu0  ;;  %v595_v33 = vpop.f32.mrf.mxu1 }
  0xe4   :  { %v572_v34 = vpop.f32.mrf.mxu0  ;;  %v596_v35 = vpop.f32.mrf.mxu1 }
  0xe5   :  { %v573_v37 = vadd.f32 %v572_v34, %v571_v32  ;;  %v597_v38 = vadd.f32 %v596_v35, %v595_v33 }
  0xe6   :  { %v574_v39 = vpop.f32.mrf.mxu0  ;;  %v598_v40 = vpop.f32.mrf.mxu1 }
  0xe7   :  { %v281_v41 = vadd.f32 %v573_v37, %v794_v36  ;;  %v313_v42 = vadd.f32 %v597_v38, %v794_v36 }
  0xe8   :  { %v575_v43 = vpop.f32.mrf.mxu0  ;;  %v599_v44 = vpop.f32.mrf.mxu1 }
  0xe9   :  { %v576_v45 = vadd.f32 %v575_v43, %v574_v39  ;;  %v600_v46 = vadd.f32 %v599_v44, %v598_v40  ;;  %v343_v51 = vmax.f32 %v281_v41, 0.0  ;;  %v351_v52 = vmax.f32 %v313_v42, 0.0 }
  0xea   :  { %v577_v47 = vpop.f32.mrf.mxu0  ;;  %v601_v48 = vpop.f32.mrf.mxu1 }
  0xeb   :  { %v284_v49 = vadd.f32 %v576_v45, %v794_v36  ;;  %v316_v50 = vadd.f32 %v600_v46, %v794_v36 }
  0xec   :  { %v578_v53 = vpop.f32.mrf.mxu0  ;;  %v602_v54 = vpop.f32.mrf.mxu1 }
  0xed   :  { %v344_v55 = vmax.f32 %v284_v49, 0.0  ;;  %v352_v56 = vmax.f32 %v316_v50, 0.0  ;;  %v579_v57 = vadd.f32 %v578_v53, %v577_v47  ;;  %v603_v58 = vadd.f32 %v602_v54, %v601_v48 }
  0xee   :  { %v580_v59 = vpop.f32.mrf.mxu0  ;;  %v604_v60 = vpop.f32.mrf.mxu1 }
  0xef   :  { %v511_v61 = vpack.c.bf16 %v344_v55, %v343_v51  ;;  %v531_v62 = vpack.c.bf16 %v352_v56, %v351_v52  ;;  %v289_v63 = vadd.f32 %v579_v57, %v794_v36  ;;  %v321_v0 = vadd.f32 %v603_v58, %v794_v36 }
  0xf0   :  { %v581_v1 = vpop.f32.mrf.mxu0  ;;  %v605_v2 = vpop.f32.mrf.mxu1 }
  0xf1   :  { %512 = vst [vmem:[%s839_s3] sm:$0xff] %v511_v61   ;;  %551 = vst [vmem:[%s839_s3 + $0x20] sm:$0xff] %v531_v62   ;;  %v582_v3 = vadd.f32 %v581_v1, %v580_v59  ;;  %v606_v4 = vadd.f32 %v605_v2, %v604_v60  ;;  %v345_v9 = vmax.f32 %v289_v63, 0.0  ;;  %v353_v10 = vmax.f32 %v321_v0, 0.0 }
  0xf2   :  { %v583_v5 = vpop.f32.mrf.mxu0  ;;  %v607_v6 = vpop.f32.mrf.mxu1 }
  0xf3   :  { %v292_v7 = vadd.f32 %v582_v3, %v794_v36  ;;  %v324_v8 = vadd.f32 %v606_v4, %v794_v36 }
  0xf4   :  { %v584_v11 = vpop.f32.mrf.mxu0  ;;  %v608_v12 = vpop.f32.mrf.mxu1 }
  0xf5   :  { %v346_v13 = vmax.f32 %v292_v7, 0.0  ;;  %v354_v14 = vmax.f32 %v324_v8, 0.0  ;;  %v585_v15 = vadd.f32 %v584_v11, %v583_v5  ;;  %v609_v16 = vadd.f32 %v608_v12, %v607_v6 }
  0xf6   :  { %v586_v17 = vpop.f32.mrf.mxu0  ;;  %v610_v18 = vpop.f32.mrf.mxu1 }
  0xf7   :  { %v516_v19 = vpack.c.bf16 %v346_v13, %v345_v9  ;;  %v536_v20 = vpack.c.bf16 %v354_v14, %v353_v10  ;;  %v297_v21 = vadd.f32 %v585_v15, %v794_v36  ;;  %v329_v22 = vadd.f32 %v609_v16, %v794_v36 }
  0xf8   :  { %v587_v23 = vpop.f32.mrf.mxu0  ;;  %v611_v24 = vpop.f32.mrf.mxu1 }
  0xf9   :  { %548 = vst [vmem:[%s839_s3 + $0x8] sm:$0xff] %v516_v19   ;;  %552 = vst [vmem:[%s839_s3 + $0x28] sm:$0xff] %v536_v20   ;;  %v588_v25 = vadd.f32 %v587_v23, %v586_v17  ;;  %v612_v26 = vadd.f32 %v611_v24, %v610_v18  ;;  %v347_v31 = vmax.f32 %v297_v21, 0.0  ;;  %v355_v32 = vmax.f32 %v329_v22, 0.0 }
  0xfa   :  { %v589_v27 = vpop.f32.mrf.mxu0  ;;  %v613_v28 = vpop.f32.mrf.mxu1 }
  0xfb   :  { %v300_v29 = vadd.f32 %v588_v25, %v794_v36  ;;  %v332_v30 = vadd.f32 %v612_v26, %v794_v36 }
  0xfc   :  { %v590_v33 = vpop.f32.mrf.mxu0  ;;  %v614_v34 = vpop.f32.mrf.mxu1 }
  0xfd   :  { %v348_v35 = vmax.f32 %v300_v29, 0.0  ;;  %v356_v37 = vmax.f32 %v332_v30, 0.0  ;;  %v591_v38 = vadd.f32 %v590_v33, %v589_v27  ;;  %v615_v39 = vadd.f32 %v614_v34, %v613_v28 }
  0xfe   :  { %v592_v40 = vpop.f32.mrf.mxu0  ;;  %v616_v41 = vpop.f32.mrf.mxu1 }
  0xff   :  { %v521_v42 = vpack.c.bf16 %v348_v35, %v347_v31  ;;  %v541_v43 = vpack.c.bf16 %v356_v37, %v355_v32  ;;  %v305_v46 = vadd.f32 %v591_v38, %v794_v36  ;;  %v337_v47 = vadd.f32 %v615_v39, %v794_v36 }
 0x100   :  { %v593_v44 = vpop.f32.mrf.mxu0  ;;  %v617_v45 = vpop.f32.mrf.mxu1 }
 0x101   :  { %549 = vst [vmem:[%s839_s3 + $0x10] sm:$0xff] %v521_v42   ;;  %553 = vst [vmem:[%s839_s3 + $0x30] sm:$0xff] %v541_v43   ;;  %v594_v48 = vadd.f32 %v593_v44, %v592_v40  ;;  %v618_v49 = vadd.f32 %v617_v45, %v616_v41  ;;  %v349_v52 = vmax.f32 %v305_v46, 0.0  ;;  %v357_v53 = vmax.f32 %v337_v47, 0.0 }
 0x103   :  { %v308_v50 = vadd.f32 %v594_v48, %v794_v36  ;;  %v340_v51 = vadd.f32 %v618_v49, %v794_v36 }
 0x105   :  { %v350_v54 = vmax.f32 %v308_v50, 0.0  ;;  %v358_v55 = vmax.f32 %v340_v51, 0.0 }
 0x107   :  { %v526_v56 = vpack.c.bf16 %v350_v54, %v349_v52  ;;  %v546_v57 = vpack.c.bf16 %v358_v55, %v357_v53 }
 0x109   :  { %550 = vst [vmem:[%s839_s3 + $0x18] sm:$0xff] %v526_v56   ;;  %554 = vst [vmem:[%s839_s3 + $0x38] sm:$0xff] %v546_v57  }

// kernel: dqn_forward.3
= control target key start
LH: loop header
LB: loop body
LE: loop exit
PB: predicated region body
PF: predicated region fallthrough
CT: control target
= control target key end

     0   :  { %v1348_v28 = vmov 0.0   ;;  %vm1349_vm0 = vmmov 0   ;;  %vm355_vm1 = vcmask 261120   ;;  %s1677_s1 = inlined_call_operand.vmem [shape: bf16[256,32], index: 1, kind: input, shape index: {}]   ;;  %s1678_s0 = inlined_call_operand.vmem [shape: bf16[72,256], index: 0, kind: input, shape index: {}]   ;;  %s1679_s3 = inlined_call_operand.vmem [shape: bf16[288,32], index: 3, kind: input, shape index: {}]   ;;  %s1680_s2 = inlined_call_operand.vmem [shape: f32[1,32], index: 2, kind: input, shape index: {}]   ;;  %s1681_s5 = inlined_call_operand.vmem [shape: bf16[32,128], index: 5, kind: input, shape index: {}]   ;;  %s1682_s7 = inlined_call_operand.vmem [shape: f32[128,128], index: 7, kind: input, shape index: {}]   ;;  %s1683_s4 = inlined_call_operand.vmem [shape: f32[1,32], index: 4, kind: input, shape index: {}]   ;;  %s1684_s6 = inlined_call_operand.vmem [shape: f32[1,128], index: 6, kind: input, shape index: {}]   ;;  %s1685_s8 = inlined_call_operand.vmem [shape: f32[1,128], index: 8, kind: input, shape index: {}]   ;;  %s1686_s9 = inlined_call_operand.vmem [shape: f32[8,128], index: 9, kind: output, shape index: {}]  }
   0x1   :  { %v1298_v0 = vld [vmem:[%s1677_s1 + $0x78] sm:$0xff]   ;;  %v1300_v2 = vld [vmem:[%s1677_s1 + $0x70] sm:$0xff]   ;;  %v1302_v4 = vld [vmem:[%s1677_s1 + $0x68] sm:$0xff]   ;;  %1181 = vmatprep.subr.bf16.mxu1 %v1348_v28  ;;  %1185 = vmatprep.mubr.msk.bf16.mxu1 %vm1349_vm0, %v1348_v28 }
   0x2   :  { %v1299_v1 = vld [vmem:[%s1677_s1 + $0x38] sm:$0xff]   ;;  %1088 = vmatprep.subr.bf16.mxu0 %v1298_v0  ;;  %v1301_v3 = vld [vmem:[%s1677_s1 + $0x30] sm:$0xff]   ;;  %v1303_v5 = vld [vmem:[%s1677_s1 + $0x28] sm:$0xff]  }
   0x3   :  { %1089 = vmatpush3.bf16.msra.mxu0 %v1299_v1  ;;  %v1304_v6 = vld [vmem:[%s1677_s1 + $0x60] sm:$0xff]   ;;  %v1306_v8 = vld [vmem:[%s1677_s1 + $0x58] sm:$0xff]   ;;  %v1308_v10 = vld [vmem:[%s1677_s1 + $0x50] sm:$0xff]  }
   0x4   :  { %1090 = vmatprep.subr.bf16.mxu0 %v1300_v2  ;;  %v1305_v7 = vld [vmem:[%s1677_s1 + $0x20] sm:$0xff]   ;;  %v1307_v9 = vld [vmem:[%s1677_s1 + $0x18] sm:$0xff]   ;;  %v1309_v12 = vld [vmem:[%s1677_s1 + $0x10] sm:$0xff]  }
   0x5   :  { %v1316_v11 = vld [vmem:[%s1678_s0 + $0x4] ss:$8 sps:$4 sm:$0xff]   ;;  %v1314_v17 = vld [vmem:[%s1678_s0] ss:$8 sps:$4 sm:$0xff]   ;;  %v1317_v18 = vld [vmem:[%s1678_s0 + $0x14] ss:$8 sps:$4 sm:$0xff]  }
   0x6   :  { %256 = vmatprep.mubr.bf16.mxu0 %v1316_v11  ;;  %v1310_v13 = vld [vmem:[%s1677_s1 + $0x48] sm:$0xff]   ;;  %v1312_v15 = vld [vmem:[%s1677_s1 + $0x40] sm:$0xff]   ;;  %v1319_v19 = vld [vmem:[%s1678_s0 + $0x10] ss:$8 sps:$4 sm:$0xff]  }
   0x7   :  { %1091 = vmatpush3.bf16.msra.mxu0 %v1301_v3  ;;  %v1311_v14 = vld [vmem:[%s1677_s1 + $0x8] sm:$0xff]   ;;  %v1313_v16 = vld [vmem:[%s1677_s1] sm:$0xff]   ;;  %v1323_v22 = vld [vmem:[%s1678_s0 + $0x34] ss:$8 sps:$4 sm:$0xff]  }
   0x8   :  { %1092 = vmatprep.subr.bf16.mxu0 %v1302_v4  ;;  %v1320_v20 = vld [vmem:[%s1678_s0 + $0x24] ss:$8 sps:$4 sm:$0xff]   ;;  %v1322_v21 = vld [vmem:[%s1678_s0 + $0x20] ss:$8 sps:$4 sm:$0xff]   ;;  %v1325_v24 = vld [vmem:[%s1678_s0 + $0x30] ss:$8 sps:$4 sm:$0xff]  }
   0x9   :  { %v41_v23 = vld [vmem:[%s1678_s0 + $0x40] sm:$0xff]  ;;  %v1328_v27 = vld [vmem:[%s1679_s3 + $0x18] sm:$0xff]   ;;  %v1329_v29 = vld [vmem:[%s1679_s3 + $0x10] sm:$0xff]  }
   0xa   :  { %v1038_v25 = vcombine.high %v41_v23, %v41_v23  ;;  %v1037_v26 = vcombine.low %v41_v23, %v41_v23  ;;  %1182 = vmatpush3.bf16.msra.mxu1 %v1328_v27  ;;  %v1492_v35 = vld [vmem:[%s1680_s2] ss:$0 sm:$0xff]  ;;  %v1330_v41 = vld [vmem:[%s1679_s3 + $0x8] sm:$0xff]   ;;  %v1334_v61 = vld [vmem:[%s1679_s3 + $0x38] sm:$0xff]  }
   0xb   :  { %1093 = vmatpush3.bf16.msra.mxu0 %v1303_v5  ;;  %1183 = vmatprep.subr.bf16.mxu1 %v1348_v28  ;;  %v1331_v46 = vld [vmem:[%s1679_s3] sm:$0xff]   ;;  %v1332_v51 = vld [vmem:[%s1679_s3 + $0x28] sm:$0xff]   ;;  %v1335_v2 = vld [vmem:[%s1679_s3 + $0x30] sm:$0xff]  }
   0xc   :  { %1094 = vmatprep.subr.bf16.mxu0 %v1304_v6  ;;  %v1333_v56 = vld [vmem:[%s1679_s3 + $0x20] sm:$0xff]   ;;  %v1342_v27 = vld [vmem:[%s1679_s3 + $0x78] sm:$0xff]  }
   0xe   :  { %1184 = vmatpush3.bf16.msra.mxu1 %v1329_v29 }
   0xf   :  { %1095 = vmatpush3.bf16.msra.mxu0 %v1305_v7  ;;  %1189 = vmatprep.subr.bf16.mxu1 %v1348_v28  ;;  %v1336_v7 = vld [vmem:[%s1679_s3 + $0x48] sm:$0xff]  }
  0x10   :  { %1096 = vmatprep.subr.bf16.mxu0 %v1306_v8 }
  0x13   :  { %1097 = vmatpush3.bf16.msra.mxu0 %v1307_v9 }
  0x14   :  { %1098 = vmatprep.subr.bf16.mxu0 %v1308_v10 }
  0x17   :  { %1099 = vmatpush3.bf16.msra.mxu0 %v1309_v12  ;;  %v1337_v12 = vld [vmem:[%s1679_s3 + $0x40] sm:$0xff]  }
  0x18   :  { %1100 = vmatprep.subr.bf16.mxu0 %v1310_v13 }
  0x1b   :  { %1101 = vmatpush3.bf16.msra.mxu0 %v1311_v14 }
  0x1c   :  { %1102 = vmatprep.subr.bf16.mxu0 %v1312_v15  ;;  %v1338_v15 = vld [vmem:[%s1679_s3 + $0x58] sm:$0xff]  }
  0x1f   :  { %1103 = vmatpush3.bf16.msra.mxu0 %v1313_v16 }
  0x20   :  { %1261 = vmatprep.subr.mxu0 %v1348_v28 }
  0x22   :  { %257 = vmatmul.mubr.bf16.vlgmr.msra.gmra.mxu0 %v1314_v17 }
  0x23   :  { %264 = vmatprep.mubr.bf16.mxu0 %v1317_v18  ;;  %v1339_v18 = vld [vmem:[%s1679_s3 + $0x50] sm:$0xff]  }
  0x2a   :  { %265 = vmatmul.mubr.bf16.gmra.mxu0 %v1319_v19 }
  0x2b   :  { %272 = vmatprep.mubr.bf16.mxu0 %v1320_v20 }
  0x32   :  { %273 = vmatmul.mubr.bf16.gmra.mxu0 %v1322_v21  ;;  %v1340_v21 = vld [vmem:[%s1679_s3 + $0x68] sm:$0xff]  }
  0x33   :  { %280 = vmatprep.mubr.bf16.mxu0 %v1323_v22 }
  0x3a   :  { %281 = vmatmul.mubr.bf16.gmra.mxu0 %v1325_v24  ;;  %v1341_v24 = vld [vmem:[%s1679_s3 + $0x60] sm:$0xff]  }
  0x3b   :  { %288 = vmatprep.mubr.bf16.mxu0 %v1038_v25 }
  0x42   :  { %289 = vmatmul.mubr.bf16.gmra.mxu0 %v1037_v26 }
  0x43   :  { %1293 = vmatprep.mubr.msk.f32.mxu0 %vm1349_vm0, %v1348_v28 }
  0xe2   :  { %v1104_v30 = vpop.f32.mrf.mxu0 }
  0xe4   :  { %v1105_v31 = vpop.f32.mrf.mxu0 }
  0xe5   :  { %v1106_v37 = vadd.f32 %v1105_v31, %v1104_v30  ;;  %v1343_v31 = vld [vmem:[%s1679_s3 + $0x70] sm:$0xff]  }
  0xe6   :  { %v1107_v32 = vpop.f32.mrf.mxu0 }
  0xe7   :  { %v259_v43 = vadd.f32 %v1106_v37, %v1492_v35 }
  0xe8   :  { %v1108_v33 = vpop.f32.mrf.mxu0 }
  0xe9   :  { %v1109_v34 = vadd.f32 %v1108_v33, %v1107_v32  ;;  %v296_v48 = vmax.f32 %v259_v43, 0.0  ;;  %v944_v43 = vld [vmem:[%s1682_s7 + $0x70] sm:$0xff] }
  0xea   :  { %v1110_v36 = vpop.f32.mrf.mxu0 }
  0xeb   :  { %v262_v38 = vadd.f32 %v1109_v34, %v1492_v35  ;;  %v341_v53 = vpack.c.bf16 %v296_v48, %v296_v48  ;;  %v1344_v34 = vld [vmem:[%s1679_s3 + $0x88] sm:$0xff]  }
  0xec   :  { %v1111_v39 = vpop.f32.mrf.mxu0  ;;  %v939_v48 = vld [vmem:[%s1682_s7 + $0x48] sm:$0xff] }
  0xed   :  { %v297_v40 = vmax.f32 %v262_v38, 0.0  ;;  %v1112_v49 = vadd.f32 %v1111_v39, %v1110_v36  ;;  %v1345_v38 = vld [vmem:[%s1679_s3 + $0x80] sm:$0xff]  }
  0xee   :  { %v1113_v42 = vpop.f32.mrf.mxu0 }
  0xef   :  { %v342_v44 = vpack.c.bf16 %v297_v40, %v297_v40  ;;  %v267_v54 = vadd.f32 %v1112_v49, %v1492_v35  ;;  %v938_v49 = vld [vmem:[%s1682_s7 + $0x40] sm:$0xff] }
  0xf0   :  { %v1114_v45 = vpop.f32.mrf.mxu0 }
  0xf1   :  { %1186 = vmatmul.mubr.msk.bf16.vlgmr.msra.gmra.mxu1 %vm355_vm1, %v342_v44  ;;  %v298_v58 = vmax.f32 %v267_v54, 0.0  ;;  %v1115_v59 = vadd.f32 %v1114_v45, %v1113_v42  ;;  %v945_v42 = vld [vmem:[%s1682_s7 + $0x78] sm:$0xff]  ;;  %v943_v44 = vld [vmem:[%s1682_s7 + $0x68] sm:$0xff]  ;;  %v942_v45 = vld [vmem:[%s1682_s7 + $0x60] sm:$0xff] }
  0xf2   :  { %1190 = vmatpush3.bf16.msra.mxu1 %v1330_v41  ;;  %1193 = vmatprep.mubr.msk.bf16.mxu1 %vm1349_vm0, %v1348_v28  ;;  %v1116_v47 = vpop.f32.mrf.mxu0  ;;  %v1347_v41 = vld [vmem:[%s1681_s5] sm:$0xff]   ;;  %v933_v54 = vld [vmem:[%s1682_s7 + $0x18] sm:$0xff] }
  0xf3   :  { %1191 = vmatprep.subr.bf16.mxu1 %v1348_v28  ;;  %v454_v63 = vpack.c.bf16 %v298_v58, %v298_v58  ;;  %v270_v0 = vadd.f32 %v1115_v59, %v1492_v35  ;;  %1262 = vmatpush3.msra.mxu0 %v945_v42  ;;  %v930_v42 = vld [vmem:[%s1682_s7] sm:$0xff] }
  0xf4   :  { %v1117_v50 = vpop.f32.mrf.mxu0  ;;  %1263 = vmatprep.subr.mxu0 %v1348_v28 }
  0xf5   :  { %v299_v4 = vmax.f32 %v270_v0, 0.0  ;;  %v1118_v5 = vadd.f32 %v1117_v50, %v1116_v47  ;;  %1264 = vmatpush3.msra.mxu0 %v944_v43  ;;  %v940_v47 = vld [vmem:[%s1682_s7 + $0x50] sm:$0xff]  ;;  %v937_v50 = vld [vmem:[%s1682_s7 + $0x38] sm:$0xff]  ;;  %v1083_v43 = vld [vmem:[%s1684_s6] ss:$0 sm:$0xff] }
  0xf6   :  { %1192 = vmatpush3.bf16.msra.mxu1 %v1331_v46  ;;  %v1119_v52 = vpop.f32.mrf.mxu0  ;;  %1265 = vmatprep.subr.mxu0 %v1348_v28  ;;  %v941_v46 = vld [vmem:[%s1682_s7 + $0x58] sm:$0xff] }
  0xf7   :  { %1197 = vmatprep.subr.bf16.mxu1 %v1348_v28  ;;  %v511_v9 = vpack.c.bf16 %v299_v4, %v299_v4  ;;  %v275_v10 = vadd.f32 %v1118_v5, %v1492_v35  ;;  %1266 = vmatpush3.msra.mxu0 %v943_v44 }
  0xf8   :  { %v1120_v55 = vpop.f32.mrf.mxu0  ;;  %1267 = vmatprep.subr.mxu0 %v1348_v28 }
  0xf9   :  { %1194 = vmatmul.mubr.msk.bf16.vlgmr.msra.gmra.mxu1 %vm355_vm1, %v341_v53  ;;  %v300_v13 = vmax.f32 %v275_v10, 0.0  ;;  %v1121_v14 = vadd.f32 %v1120_v55, %v1119_v52  ;;  %1268 = vmatpush3.msra.mxu0 %v942_v45  ;;  %v935_v52 = vld [vmem:[%s1682_s7 + $0x28] sm:$0xff]  ;;  %v934_v53 = vld [vmem:[%s1682_s7 + $0x20] sm:$0xff]  ;;  %v932_v55 = vld [vmem:[%s1682_s7 + $0x10] sm:$0xff] }
  0xfa   :  { %1198 = vmatpush3.bf16.msra.mxu1 %v1332_v51  ;;  %1201 = vmatprep.mubr.msk.bf16.mxu1 %vm1349_vm0, %v1348_v28  ;;  %v1122_v57 = vpop.f32.mrf.mxu0  ;;  %v936_v51 = vld [vmem:[%s1682_s7 + $0x30] sm:$0xff] }
  0xfb   :  { %1199 = vmatprep.subr.bf16.mxu1 %v1348_v28  ;;  %v568_v16 = vpack.c.bf16 %v300_v13, %v300_v13  ;;  %v278_v17 = vadd.f32 %v1121_v14, %v1492_v35  ;;  %1269 = vmatprep.subr.mxu0 %v1348_v28 }
  0xfc   :  { %v1123_v60 = vpop.f32.mrf.mxu0  ;;  %1270 = vmatpush3.msra.mxu0 %v941_v46 }
  0xfd   :  { %v301_v19 = vmax.f32 %v278_v17, 0.0  ;;  %v1124_v20 = vadd.f32 %v1123_v60, %v1122_v57  ;;  %1271 = vmatprep.subr.mxu0 %v1348_v28 }
  0xfe   :  { %1200 = vmatpush3.bf16.msra.mxu1 %v1333_v56  ;;  %v1125_v62 = vpop.f32.mrf.mxu0  ;;  %1272 = vmatpush3.msra.mxu0 %v940_v47 }
  0xff   :  { %1205 = vmatprep.subr.bf16.mxu1 %v1348_v28  ;;  %v625_v22 = vpack.c.bf16 %v301_v19, %v301_v19  ;;  %v283_v23 = vadd.f32 %v1124_v20, %v1492_v35  ;;  %1273 = vmatprep.subr.mxu0 %v1348_v28 }
 0x100   :  { %v1126_v1 = vpop.f32.mrf.mxu0  ;;  %1274 = vmatpush3.msra.mxu0 %v939_v48 }
 0x101   :  { %1202 = vmatmul.mubr.msk.bf16.vlgmr.msra.gmra.mxu1 %vm355_vm1, %v454_v63  ;;  %v302_v25 = vmax.f32 %v283_v23, 0.0  ;;  %v1127_v26 = vadd.f32 %v1126_v1, %v1125_v62  ;;  %1275 = vmatprep.subr.mxu0 %v1348_v28 }
 0x102   :  { %1206 = vmatpush3.bf16.msra.mxu1 %v1334_v61  ;;  %1209 = vmatprep.mubr.msk.bf16.mxu1 %vm1349_vm0, %v1348_v28  ;;  %v1128_v3 = vpop.f32.mrf.mxu0 }
 0x103   :  { %1207 = vmatprep.subr.bf16.mxu1 %v1348_v28  ;;  %v682_v29 = vpack.c.bf16 %v302_v25, %v302_v25  ;;  %v286_v30 = vadd.f32 %v1127_v26, %v1492_v35  ;;  %1276 = vmatpush3.msra.mxu0 %v938_v49 }
 0x104   :  { %v1129_v6 = vpop.f32.mrf.mxu0  ;;  %1277 = vmatprep.subr.mxu0 %v1348_v28 }
 0x105   :  { %v303_v32 = vmax.f32 %v286_v30, 0.0  ;;  %v1130_v33 = vadd.f32 %v1129_v6, %v1128_v3  ;;  %1278 = vmatpush3.msra.mxu0 %v937_v50 }
 0x106   :  { %1208 = vmatpush3.bf16.msra.mxu1 %v1335_v2  ;;  %v1131_v8 = vpop.f32.mrf.mxu0  ;;  %1279 = vmatprep.subr.mxu0 %v1348_v28 }
 0x107   :  { %1213 = vmatprep.subr.bf16.mxu1 %v1348_v28  ;;  %v739_v36 = vpack.c.bf16 %v303_v32, %v303_v32  ;;  %v291_v37 = vadd.f32 %v1130_v33, %v1492_v35  ;;  %v1346_v35 = vld [vmem:[%s1681_s5 + $0x8] sm:$0xff]   ;;  %1280 = vmatpush3.msra.mxu0 %v936_v51  ;;  %v1082_v33 = vld [vmem:[%s1683_s4] ss:$0 sm:$0xff] }
 0x108   :  { %v1132_v11 = vpop.f32.mrf.mxu0  ;;  %1281 = vmatprep.subr.mxu0 %v1348_v28 }
 0x109   :  { %1210 = vmatmul.mubr.msk.bf16.vlgmr.msra.gmra.mxu1 %vm355_vm1, %v511_v9  ;;  %v304_v39 = vmax.f32 %v291_v37, 0.0  ;;  %1282 = vmatpush3.msra.mxu0 %v935_v52 }
 0x10a   :  { %1214 = vmatpush3.bf16.msra.mxu1 %v1336_v7  ;;  %1217 = vmatprep.mubr.msk.bf16.mxu1 %vm1349_vm0, %v1348_v28 }
 0x10b   :  { %1215 = vmatprep.subr.bf16.mxu1 %v1348_v28  ;;  %v796_v40 = vpack.c.bf16 %v304_v39, %v304_v39  ;;  %1283 = vmatprep.subr.mxu0 %v1348_v28 }
 0x10c   :  { %1284 = vmatpush3.msra.mxu0 %v934_v53 }
 0x10d   :  { %1285 = vmatprep.subr.mxu0 %v1348_v28 }
 0x10e   :  { %1216 = vmatpush3.bf16.msra.mxu1 %v1337_v12  ;;  %1286 = vmatpush3.msra.mxu0 %v933_v54 }
 0x10f   :  { %1221 = vmatprep.subr.bf16.mxu1 %v1348_v28  ;;  %1287 = vmatprep.subr.mxu0 %v1348_v28 }
 0x110   :  { %1288 = vmatpush3.msra.mxu0 %v932_v55 }
 0x111   :  { %1218 = vmatmul.mubr.msk.bf16.vlgmr.msra.gmra.mxu1 %vm355_vm1, %v568_v16  ;;  %1289 = vmatprep.subr.mxu0 %v1348_v28 }
 0x112   :  { %1222 = vmatpush3.bf16.msra.mxu1 %v1338_v15  ;;  %1225 = vmatprep.mubr.msk.bf16.mxu1 %vm1349_vm0, %v1348_v28 }
 0x113   :  { %1223 = vmatprep.subr.bf16.mxu1 %v1348_v28 }
 0x116   :  { %1224 = vmatpush3.bf16.msra.mxu1 %v1339_v18 }
 0x117   :  { %1229 = vmatprep.subr.bf16.mxu1 %v1348_v28 }
 0x119   :  { %1226 = vmatmul.mubr.msk.bf16.vlgmr.msra.gmra.mxu1 %vm355_vm1, %v625_v22 }
 0x11a   :  { %1230 = vmatpush3.bf16.msra.mxu1 %v1340_v21  ;;  %1233 = vmatprep.mubr.msk.bf16.mxu1 %vm1349_vm0, %v1348_v28 }
 0x11b   :  { %1231 = vmatprep.subr.bf16.mxu1 %v1348_v28 }
 0x11e   :  { %1232 = vmatpush3.bf16.msra.mxu1 %v1341_v24 }
 0x11f   :  { %1237 = vmatprep.subr.bf16.mxu1 %v1348_v28 }
 0x121   :  { %1234 = vmatmul.mubr.msk.bf16.vlgmr.msra.gmra.mxu1 %vm355_vm1, %v682_v29 }
 0x122   :  { %1238 = vmatpush3.bf16.msra.mxu1 %v1342_v27  ;;  %1241 = vmatprep.mubr.msk.bf16.mxu1 %vm1349_vm0, %v1348_v28 }
 0x123   :  { %1239 = vmatprep.subr.bf16.mxu1 %v1348_v28 }
 0x126   :  { %1240 = vmatpush3.bf16.msra.mxu1 %v1343_v31 }
 0x127   :  { %1245 = vmatprep.subr.bf16.mxu1 %v1348_v28 }
 0x129   :  { %1242 = vmatmul.mubr.msk.bf16.vlgmr.msra.gmra.mxu1 %vm355_vm1, %v739_v36 }
 0x12a   :  { %1246 = vmatpush3.bf16.msra.mxu1 %v1344_v34  ;;  %1249 = vmatprep.mubr.msk.bf16.mxu1 %vm1349_vm0, %v1348_v28 }
 0x12b   :  { %1247 = vmatprep.subr.bf16.mxu1 %v1348_v28 }
 0x12e   :  { %1248 = vmatpush3.bf16.msra.mxu1 %v1345_v38 }
 0x12f   :  { %1253 = vmatprep.subr.bf16.mxu1 %v1348_v28 }
 0x131   :  { %1250 = vmatmul.mubr.msk.bf16.vlgmr.msra.gmra.mxu1 %vm355_vm1, %v796_v40 }
 0x132   :  { %1257 = vmatprep.mubr.msk.bf16.mxu1 %vm1349_vm0, %v1348_v28  ;;  %1254 = vmatpush3.bf16.msra.mxu1 %v1346_v35 }
 0x133   :  { %1255 = vmatprep.subr.bf16.mxu1 %v1348_v28 }
 0x136   :  { %1256 = vmatpush3.bf16.msra.mxu1 %v1347_v41  ;;  %v931_v41 = vld [vmem:[%s1682_s7 + $0x8] sm:$0xff] }
 0x137   :  { %1290 = vmatpush3.msra.mxu0 %v931_v41 }
 0x138   :  { %1291 = vmatprep.subr.mxu0 %v1348_v28  ;;  %v1087_v28 = vld [vmem:[%s1685_s8] ss:$0 sm:$0xff] }
 0x139   :  { %1292 = vmatpush3.msra.mxu0 %v930_v42 }
 0x1b1   :  { %v393_v56 = vpop.f32.mrf.mxu1 }
 0x1b3   :  { %v1187_v57 = vpop.f32.mrf.mxu1 }
 0x1b5   :  { %v396_v58 = vpop.f32.mrf.mxu1 }
 0x1b7   :  { %v1188_v59 = vpop.f32.mrf.mxu1 }
 0x1b9   :  { %v448_v60 = vpop.f32.mrf.mxu1 }
 0x1ba   :  { %v449_v18 = vadd.f32 %v448_v60, %v393_v56 }
 0x1bb   :  { %v1195_v61 = vpop.f32.mrf.mxu1 }
 0x1bd   :  { %v451_v62 = vpop.f32.mrf.mxu1 }
 0x1bf   :  { %v1196_v63 = vpop.f32.mrf.mxu1 }
 0x1c1   :  { %v504_v0 = vpop.f32.mrf.mxu1 }
 0x1c2   :  { %v510_v20 = vadd.f32 %v504_v0, %v449_v18 }
 0x1c3   :  { %v1203_v1 = vpop.f32.mrf.mxu1 }
 0x1c5   :  { %v507_v2 = vpop.f32.mrf.mxu1 }
 0x1c7   :  { %v1204_v3 = vpop.f32.mrf.mxu1 }
 0x1c9   :  { %v561_v4 = vpop.f32.mrf.mxu1 }
 0x1ca   :  { %v567_v22 = vadd.f32 %v561_v4, %v510_v20 }
 0x1cb   :  { %v1211_v5 = vpop.f32.mrf.mxu1 }
 0x1cd   :  { %v564_v6 = vpop.f32.mrf.mxu1 }
 0x1cf   :  { %v1212_v7 = vpop.f32.mrf.mxu1 }
 0x1d1   :  { %v618_v8 = vpop.f32.mrf.mxu1 }
 0x1d2   :  { %v624_v24 = vadd.f32 %v618_v8, %v567_v22 }
 0x1d3   :  { %v1219_v9 = vpop.f32.mrf.mxu1 }
 0x1d5   :  { %v621_v10 = vpop.f32.mrf.mxu1 }
 0x1d7   :  { %v1220_v11 = vpop.f32.mrf.mxu1 }
 0x1d9   :  { %v675_v12 = vpop.f32.mrf.mxu1 }
 0x1da   :  { %v681_v26 = vadd.f32 %v675_v12, %v624_v24 }
 0x1db   :  { %v1227_v13 = vpop.f32.mrf.mxu1 }
 0x1dd   :  { %v678_v14 = vpop.f32.mrf.mxu1 }
 0x1df   :  { %v1228_v15 = vpop.f32.mrf.mxu1 }
 0x1e1   :  { %v732_v16 = vpop.f32.mrf.mxu1 }
 0x1e2   :  { %v738_v29 = vadd.f32 %v732_v16, %v681_v26 }
 0x1e3   :  { %v1235_v17 = vpop.f32.mrf.mxu1 }
 0x1e5   :  { %v735_v19 = vpop.f32.mrf.mxu1 }
 0x1e7   :  { %v1236_v21 = vpop.f32.mrf.mxu1 }
 0x1e9   :  { %v789_v23 = vpop.f32.mrf.mxu1 }
 0x1ea   :  { %v795_v31 = vadd.f32 %v789_v23, %v738_v29 }
 0x1eb   :  { %v1243_v25 = vpop.f32.mrf.mxu1 }
 0x1ed   :  { %v792_v27 = vpop.f32.mrf.mxu1 }
 0x1ef   :  { %v1244_v30 = vpop.f32.mrf.mxu1 }
 0x1f1   :  { %v846_v32 = vpop.f32.mrf.mxu1 }
 0x1f2   :  { %v852_v34 = vadd.f32 %v846_v32, %v795_v31 }
 0x1f3   :  { %v1251_v36 = vpop.f32.mrf.mxu1 }
 0x1f4   :  { %v860_v37 = vadd.f32 %v1082_v33, %v852_v34 }
 0x1f5   :  { %v849_v38 = vpop.f32.mrf.mxu1 }
 0x1f6   :  { %v861_v39 = vmax.f32 %v860_v37, 0.0 }
 0x1f7   :  { %v1252_v40 = vpop.f32.mrf.mxu1 }
 0x1f8   :  { %v862_v35 = vpack.c.bf16 %v861_v39, %v861_v39 }
 0x1fa   :  { %1258 = vmatmul.mubr.msk.bf16.vlgmr.msra.gmra.mxu1 %vm355_vm1, %v862_v35 }
 0x2ba   :  { %v923_v44 = vpop.f32.mrf.mxu1 }
 0x2bb   :  { %v924_v45 = vadd.f32 %v1083_v43, %v923_v44 }
 0x2bc   :  { %v1259_v46 = vpop.f32.mrf.mxu1 }
 0x2bd   :  { %v929_v47 = vmax.f32 %v924_v45, 0.0 }
 0x2be   :  { %v926_v48 = vpop.f32.mrf.mxu1 }
 0x2bf   :  { %1294 = vmatmul.mubr.f32.vlgmr.msra.gmra.mxu0 %v929_v47 }
 0x2c0   :  { %v1260_v49 = vpop.f32.mrf.mxu1 }
 0x37f   :  { %v1019_v50 = vpop.f32.mrf.mxu0 }
 0x380   :  { %v1020_v51 = vadd.f32 %v1087_v28, %v1019_v50 }
 0x381   :  { %v1295_v52 = vpop.f32.mrf.mxu0 }
 0x382   :  { %1023 = vst [vmem:[%s1686_s9] sm:$0xff] %v1020_v51 }

</bundles_post_ra>
